<compile_context>
chip_gen: v5e
topology: v5e:2x2
jax: 0.10.0
libtpu: 0.0.40
codegen_flags: <defaults>
</compile_context>

<pallas_src>
import jax
import jax.numpy as jnp
from jax.experimental import pallas as pl
from jax.experimental.pallas import tpu as pltpu

EPS = 1e-5           # nn.LayerNorm default eps
LANE = 128           # TPU lane width
SUBLANE = 8          # TPU sublane width
_MiB = 1024 * 1024


def _my_layernorm_kernel(x_ref, gamma_ref, beta_ref, o_ref):
    # x_ref: (Bt, L, C) block; gamma_ref/beta_ref: (1, C).
    x = x_ref[...].astype(jnp.float32)
    gamma = gamma_ref[...].astype(jnp.float32)   # (1, C)
    beta = beta_ref[...].astype(jnp.float32)     # (1, C)

    c = x.shape[-1]
    inv_c = jnp.float32(1.0 / c)

    # LayerNorm over the channel axis, biased variance (torch semantics).
    mu = jnp.sum(x, axis=-1, keepdims=True) * inv_c
    xc = x - mu
    var = jnp.sum(xc * xc, axis=-1, keepdims=True) * inv_c
    x_hat = xc * jax.lax.rsqrt(var + EPS)
    x_hat = x_hat * gamma[:, None, :] + beta[:, None, :]     # (Bt, L, C)

    # bias = mean over the sequence dim, broadcast back and subtract.
    bias = jnp.mean(x_hat, axis=1, keepdims=True)            # (Bt, 1, C)
    o_ref[...] = (x_hat - bias).astype(o_ref.dtype)


def _round_up(n, m):
    return ((n + m - 1) // m) * m


def _vmem_limit_bytes():
    """Pick an explicit scoped-VMEM limit with headroom per generation."""
    try:
        cap = pltpu.get_tpu_info().vmem_capacity_bytes
    except Exception:
        cap = 64 * _MiB  # conservative (v7x-sized) fallback
    # Leave ~16 MiB headroom, cap at 96 MiB (v5e/v6e), floor at 32 MiB.
    return int(max(32 * _MiB, min(cap - 16 * _MiB, 96 * _MiB)))


def _choose_block_batch(B, L, C, itemsize, vmem_limit):
    """Pick Bt (a divisor of B) such that the double-buffered in/out tiles
    PLUS the kernel's block-sized f32 temporaries fit VMEM, the HBM tile stays
    in the ~MiB sweet spot, and the grid keeps both v7x cores pipelined when
    that doesn't cost tile size."""
    # VMEM footprint per batch row inside a block (VMEM pads L->8, C->128).
    Lp = _round_up(L, SUBLANE)
    Cp = _round_up(C, LANE)
    per_batch_io = Lp * Cp * itemsize         # one in- or out-buffer copy
    per_batch_tmp = Lp * Cp * 4               # one f32 temporary
    # 2x in + 2x out double buffers + ~4 full-block f32 temporaries
    # (x.astype(f32), xc, x_hat, scaled x_hat).
    per_batch_vmem = 4 * per_batch_io + 4 * per_batch_tmp
    budget = int(vmem_limit * 0.7)
    max_bt = max(1, budget // per_batch_vmem)

    # Mem-bound kernel: ~1-4 MiB contiguous HBM tiles already reach 85%+ of
    # the roofline, so cap the per-step input tile at ~8 MiB.
    per_batch_hbm = max(1, L * C * itemsize)
    max_bt = min(max_bt, max(1, (8 * _MiB) // per_batch_hbm), B)

    divisors = [d for d in range(1, B + 1) if B % d == 0 and d <= max_bt]
    if not divisors:
        divisors = [1]

    def largest(min_steps):
        cands = [d for d in divisors if B // d >= min_steps]
        return max(cands) if cands else None

    unconstrained = largest(1) or 1
    # Prefer >= 4 grid steps (2 TCs x 2 iterations on v7x), then >= 2 steps
    # (pipeline overlap), but only when that keeps tiles >= ~1 MiB or doesn't
    # actually shrink them; single-core chips fall through to unconstrained.
    for min_steps in (4, 2):
        d = largest(min_steps)
        if d is not None and (d == unconstrained or d * per_batch_hbm >= _MiB):
            return d
    return unconstrained
    # TODO(synk): if L*C at Bt=1 ever exceeds the VMEM budget (very long
    # sequences on v7x), switch to a two-pass split-L scheme (pass 1: per-row
    # LN stats + partial seq-sum accumulation, pass 2: bias subtraction).


def my_layernorm(x, gamma, beta):
    """x: [B, L, C]; gamma, beta: [C].  Returns [B, L, C]."""
    B, L, C = x.shape
    itemsize = jnp.dtype(x.dtype).itemsize

    gamma2d = gamma.reshape(1, C)
    beta2d = beta.reshape(1, C)

    vmem_limit = _vmem_limit_bytes()
    bt = _choose_block_batch(B, L, C, itemsize, vmem_limit)
    grid = (B // bt,)

    return pl.pallas_call(
        _my_layernorm_kernel,
        out_shape=jax.ShapeDtypeStruct((B, L, C), x.dtype),
        grid_spec=pltpu.PrefetchScalarGridSpec(
            num_scalar_prefetch=0,
            grid=grid,
            in_specs=[
                # Block's last two dims equal the full array dims, so this is
                # legal for any C (no 128-divisibility requirement).
                pl.BlockSpec((bt, L, C), lambda i: (i, 0, 0)),
                pl.BlockSpec((1, C), lambda i: (0, 0)),
                pl.BlockSpec((1, C), lambda i: (0, 0)),
            ],
            out_specs=pl.BlockSpec((bt, L, C), lambda i: (i, 0, 0)),
        ),
        compiler_params=pltpu.CompilerParams(
            dimension_semantics=("parallel",),
            vmem_limit_bytes=vmem_limit,
        ),
    )(x, gamma2d, beta2d)


def _reference(x, gamma, beta):
    xf = x.astype(jnp.float32)
    mu = jnp.mean(xf, axis=-1, keepdims=True)
    var = jnp.mean((xf - mu) ** 2, axis=-1, keepdims=True)
    x_hat = (xf - mu) * jax.lax.rsqrt(var + EPS) * gamma + beta
    bias = jnp.mean(x_hat, axis=1, keepdims=True)
    return (x_hat - bias).astype(x.dtype)


def _run_case(key, B, L, C):
    kx, kg, kb = jax.random.split(key, 3)
    x = jax.random.normal(kx, (B, L, C), dtype=jnp.float32)
    gamma = 1.0 + 0.1 * jax.random.normal(kg, (C,), dtype=jnp.float32)
    beta = 0.1 * jax.random.normal(kb, (C,), dtype=jnp.float32)

    out = my_layernorm(x, gamma, beta)
    out = jax.block_until_ready(out)

    ref = _reference(x, gamma, beta)
    assert out.shape == (B, L, C)
    assert jnp.allclose(out, ref, atol=1e-5, rtol=1e-5), (
        f"mismatch vs reference at shape {(B, L, C)}"
    )


if __name__ == "__main__":
    key = jax.random.PRNGKey(0)
    k1, k2 = jax.random.split(key)

    # Small shape matching the module spec (C not a multiple of 128 — exercises
    # the unpadded lane path).
    _run_case(k1, B=2, L=8, C=32)
    # Lane-dense shape with multi-batch blocks.
    _run_case(k2, B=4, L=16, C=128)

    print("KERNEL_OK")
</pallas_src>

<mosaic_0001>
module attributes {stable_mosaic.version = 11 : i64} {
  func.func @_my_layernorm_kernel(%arg0: i32, %arg1: memref<2x8x32xf32, #tpu.memory_space<vmem>>, %arg2: memref<1x32xf32, #tpu.memory_space<vmem>>, %arg3: memref<1x32xf32, #tpu.memory_space<vmem>>, %arg4: memref<2x8x32xf32, #tpu.memory_space<vmem>>) attributes {dimension_semantics = [#tpu.dimension_semantics<parallel>], iteration_bounds = array<i64: 1>, scalar_prefetch = 0 : i64, scratch_operands = 0 : i64, tpu.core_type = #tpu.core_type<tc>, window_params = [{transform_indices = @transform_0, window_bounds = array<i64: 2, 8, 32>}, {pipeline_mode = #tpu.pipeline_mode<synchronous>, transform_indices = @transform_1, window_bounds = array<i64: 1, 32>}, {pipeline_mode = #tpu.pipeline_mode<synchronous>, transform_indices = @transform_2, window_bounds = array<i64: 1, 32>}, {transform_indices = @transform_3, window_bounds = array<i64: 2, 8, 32>}]} {
    %c0 = arith.constant 0 : index
    %c0_0 = arith.constant 0 : index
    %c0_1 = arith.constant 0 : index
    %0 = vector.load %arg1[%c0, %c0_0, %c0_1] : memref<2x8x32xf32, #tpu.memory_space<vmem>>, vector<2x8x32xf32>
    %c0_2 = arith.constant 0 : index
    %c0_3 = arith.constant 0 : index
    %1 = vector.load %arg2[%c0_2, %c0_3] : memref<1x32xf32, #tpu.memory_space<vmem>>, vector<1x32xf32>
    %c0_4 = arith.constant 0 : index
    %c0_5 = arith.constant 0 : index
    %2 = vector.load %arg3[%c0_4, %c0_5] : memref<1x32xf32, #tpu.memory_space<vmem>>, vector<1x32xf32>
    %cst = arith.constant dense<0.000000e+00> : vector<2x8xf32>
    %3 = vector.multi_reduction <add>, %0, %cst [2] : vector<2x8x32xf32> to vector<2x8xf32>
    %4 = vector.shape_cast %3 : vector<2x8xf32> to vector<2x8x1xf32>
    %cst_6 = arith.constant 3.125000e-02 : f32
    %5 = vector.broadcast %cst_6 : f32 to vector<2x8x1xf32>
    %6 = arith.mulf %4, %5 : vector<2x8x1xf32>
    %7 = vector.broadcast %6 : vector<2x8x1xf32> to vector<2x8x32xf32>
    %8 = arith.subf %0, %7 : vector<2x8x32xf32>
    %9 = arith.mulf %8, %8 : vector<2x8x32xf32>
    %cst_7 = arith.constant dense<0.000000e+00> : vector<2x8xf32>
    %10 = vector.multi_reduction <add>, %9, %cst_7 [2] : vector<2x8x32xf32> to vector<2x8xf32>
    %11 = vector.shape_cast %10 : vector<2x8xf32> to vector<2x8x1xf32>
    %cst_8 = arith.constant 3.125000e-02 : f32
    %12 = vector.broadcast %cst_8 : f32 to vector<2x8x1xf32>
    %13 = arith.mulf %11, %12 : vector<2x8x1xf32>
    %cst_9 = arith.constant 9.99999974E-6 : f32
    %14 = vector.broadcast %cst_9 : f32 to vector<2x8x1xf32>
    %15 = arith.addf %13, %14 : vector<2x8x1xf32>
    %16 = math.rsqrt %15 : vector<2x8x1xf32>
    %17 = vector.broadcast %16 : vector<2x8x1xf32> to vector<2x8x32xf32>
    %18 = arith.mulf %8, %17 : vector<2x8x32xf32>
    %19 = vector.shape_cast %1 : vector<1x32xf32> to vector<1x1x32xf32>
    %20 = vector.broadcast %19 : vector<1x1x32xf32> to vector<2x8x32xf32>
    %21 = arith.mulf %18, %20 : vector<2x8x32xf32>
    %22 = vector.shape_cast %2 : vector<1x32xf32> to vector<1x1x32xf32>
    %23 = vector.broadcast %22 : vector<1x1x32xf32> to vector<2x8x32xf32>
    %24 = arith.addf %21, %23 : vector<2x8x32xf32>
    %cst_10 = arith.constant dense<0.000000e+00> : vector<2x32xf32>
    %25 = vector.multi_reduction <add>, %24, %cst_10 [1] : vector<2x8x32xf32> to vector<2x32xf32>
    %26 = vector.shape_cast %25 : vector<2x32xf32> to vector<2x1x32xf32>
    %cst_11 = arith.constant 8.000000e+00 : f32
    %27 = vector.broadcast %cst_11 : f32 to vector<2x1x32xf32>
    %28 = arith.divf %26, %27 : vector<2x1x32xf32>
    %29 = vector.broadcast %28 : vector<2x1x32xf32> to vector<2x8x32xf32>
    %30 = arith.subf %24, %29 : vector<2x8x32xf32>
    %c0_12 = arith.constant 0 : index
    %c0_13 = arith.constant 0 : index
    %c0_14 = arith.constant 0 : index
    %31 = vector.load %arg4[%c0_12, %c0_13, %c0_14] : memref<2x8x32xf32, #tpu.memory_space<vmem>>, vector<2x8x32xf32>
    tpu.vector_store %arg4[%c0_12, %c0_13, %c0_14], %30 {strides = array<i32>} : memref<2x8x32xf32, #tpu.memory_space<vmem>>, vector<2x8x32xf32>,
    return
  }
  func.func @transform_0(%arg0: i32) -> (i32, i32, i32) {
    %c0_i32 = arith.constant 0 : i32
    %c0_i32_0 = arith.constant 0 : i32
    %c0_i32_1 = arith.constant 0 : i32
    return %arg0, %c0_i32, %c0_i32_0 : i32, i32, i32
  }
  func.func @transform_1(%arg0: i32) -> (i32, i32) {
    %c0_i32 = arith.constant 0 : i32
    %c0_i32_0 = arith.constant 0 : i32
    %c0_i32_1 = arith.constant 0 : i32
    return %c0_i32, %c0_i32_0 : i32, i32
  }
  func.func @transform_2(%arg0: i32) -> (i32, i32) {
    %c0_i32 = arith.constant 0 : i32
    %c0_i32_0 = arith.constant 0 : i32
    %c0_i32_1 = arith.constant 0 : i32
    return %c0_i32, %c0_i32_0 : i32, i32
  }
  func.func @transform_3(%arg0: i32) -> (i32, i32, i32) {
    %c0_i32 = arith.constant 0 : i32
    %c0_i32_0 = arith.constant 0 : i32
    %c0_i32_1 = arith.constant 0 : i32
    return %arg0, %c0_i32, %c0_i32_0 : i32, i32, i32
  }
}

</mosaic_0001>

<bundles_post_ra>
// kernel: tpu_custom_call.1
= control target key start
LH: loop header
LB: loop body
LE: loop exit
PB: predicated region body
PF: predicated region fallthrough
CT: control target
= control target key end

     0   :  { %8 = vsyncpa [#allocation3], 0  ;;  %s295_s0 = inlined_call_operand.hbm [shape: f32[2,8,32], index: 0, kind: input, shape index: {}]   ;;  %s296_s1 = inlined_call_operand.hbm [shape: f32[1,32], index: 1, kind: input, shape index: {}]   ;;  %s297_s2 = inlined_call_operand.vmem [shape: f32[1,32], index: 2, kind: input, shape index: {}]   ;;  %s298_s3 = inlined_call_operand.hbm [shape: f32[2,8,32], index: 3, kind: output, shape index: {}]  }
   0x1   :  { %9 = vsyncpa [#allocation6], 0 }
   0x2   :  { %10 = vsyncpa [#allocation4], 0  ;;  %s15_s14 = sshll.u32 %s295_s0, 4  ;;  %s243_s15 = smov [#allocation2]   ;;  %s16_s14 = int_to_ptr.hbm [resolvable:$true] %s15_s14 }
   0x3   :  { %s17_s16 = sshll.u32 %s243_s15, 4  ;;  %s29_s19 = sshll.u32 %s296_s1, 4  ;;  %s18_s16 = int_to_ptr.vmem [resolvable:$true] %s17_s16  ;;  %s30_s19 = int_to_ptr.hbm [resolvable:$true] %s29_s19 }
   0x4   :  { %s244_s20 = smov 128   ;;  %s245_s21 = smov 8  }
   0x5   :  { %23 = dma.hbm_to_vmem [thread:$0]  %s16_s14, 256, %s18_s16, [#allocation3], %s244_s20, %s244_s20, %s245_s21  }
   0x6   :  { %s246_s22 = smov [#allocation5]  }
   0x7   :  { %s31_s23 = sshll.u32 %s246_s22, 4  ;;  %s32_s23 = int_to_ptr.vmem [resolvable:$true] %s31_s23 }
   0x8   :  { %34 = dma.hbm_to_vmem [thread:$0]  %s30_s19, 16, %s32_s23, [#allocation6]  }
   0x9   :  { %237 = dma.done.wait [#allocation3], 256  }
   0xa   :  { %238 = vsyncadd [#allocation3], 4294967040 }
   0xb   :  { %239 = dma.done.wait [#allocation6], 16  }
   0xc   :  { %240 = vsyncadd [#allocation6], 4294967280  ;;  %vm49_vm0 = vcmask 261120   ;;  %v45_v0 = vld [vmem:[#allocation2] sm:$0xff]  ;;  %v46_v2 = vld [vmem:[#allocation2 + $0x8] sm:$0xff]  ;;  %v247_v23 = vmov 8.0  }
   0xd   :  { %v50_v1 = vsel %vm49_vm0, %v45_v0, 0.0  ;;  %v53_v3 = vsel %vm49_vm0, %v46_v2, 0.0  ;;  %v157_v30 = vld [vmem:[#allocation5] ss:$0 sm:$0xff]  ;;  %v158_v34 = vld [vmem:[%s297_s2] ss:$0 sm:$0xff] }
   0xe   :  { %51 = vadd.xlane.f32.xlu0 %v50_v1  ;;  %s248_s2 = smov [#allocation7]   ;;  %s137_s27 = sshll.u32 %s298_s3, 4  ;;  %s138_s27 = int_to_ptr.hbm [resolvable:$true] %s137_s27 }
   0xf   :  { %s135_s24 = sshll.u32 %s248_s2, 4  ;;  %s136_s24 = int_to_ptr.vmem [resolvable:$true] %s135_s24 }
  0x16   :  { %54 = vadd.xlane.f32.xlu0 %v53_v3 }
  0x81   :  { %v52_v4 = vpop.xlane.xlu0 %51 }
  0x82   :  { %v56_v5 = vmul.f32 0.03125, %v52_v4 }
  0x84   :  { %v58_v6 = vsub.f32 %v45_v0, %v56_v5 }
  0x86   :  { %v60_v7 = vmul.f32 %v58_v6, %v58_v6 }
  0x88   :  { %v62_v8 = vsel %vm49_vm0, %v60_v7, 0.0 }
  0x89   :  { %63 = vadd.xlane.f32.xlu1 %v62_v8  ;;  %v55_v9 = vpop.xlane.xlu0 %54 }
  0x8a   :  { %v57_v10 = vmul.f32 0.03125, %v55_v9 }
  0x8c   :  { %v59_v11 = vsub.f32 %v46_v2, %v57_v10 }
  0x8e   :  { %v61_v12 = vmul.f32 %v59_v11, %v59_v11 }
  0x90   :  { %v65_v13 = vsel %vm49_vm0, %v61_v12, 0.0 }
  0x91   :  { %66 = vadd.xlane.f32.xlu1 %v65_v13 }
  0xfc   :  { %v64_v14 = vpop.xlane.xlu1 %63 }
  0xfd   :  { %v68_v15 = vmul.f32 0.03125, %v64_v14 }
  0xff   :  { %v70_v16 = vadd.f32 1e-05, %v68_v15 }
 0x101   :  { %159 = vrsqrt.f32 %v70_v16  ;;  %vm78_vm2 = vweird.f32 %v70_v16 }
 0x104   :  { %v67_v17 = vpop.xlane.xlu1 %66 }
 0x105   :  { %v69_v18 = vmul.f32 0.03125, %v67_v17 }
 0x107   :  { %v160_v19 = vpop.eup %159  ;;  %v71_v20 = vadd.f32 1e-05, %v69_v18 }
 0x108   :  { %v73_v21 = vmul.f32 %v160_v19, %v70_v16  ;;  %vm79_vm1 = vweird.f32 %v160_v19 }
 0x109   :  { %161 = vrsqrt.f32 %v71_v20  ;;  %vm80_vm3 = vmor %vm78_vm2, %vm79_vm1  ;;  %vm88_vm5 = vweird.f32 %v71_v20 }
 0x10a   :  { %v74_v22 = vmul.f32 %v160_v19, %v73_v21  ;;  %163 = vrcp.f32 %v247_v23 }
 0x10c   :  { %v75_v24 = vmul.f32 0.5, %v74_v22 }
 0x10e   :  { %v76_v25 = vsub.f32 1.5, %v75_v24 }
 0x10f   :  { %v162_v26 = vpop.eup %161 }
 0x110   :  { %v164_v27 = vpop.eup %163  ;;  %v77_v28 = vmul.f32 %v160_v19, %v76_v25  ;;  %v83_v29 = vmul.f32 %v162_v26, %v71_v20  ;;  %vm89_vm4 = vweird.f32 %v162_v26 }
 0x111   :  { %v119_v35 = vmul.f32 8.0, %v164_v27  ;;  %vm90_vm6 = vmor %vm88_vm5, %vm89_vm4  ;;  %vm123_vm7 = vweird.f32 %v164_v27 }
 0x112   :  { %v81_v31 = vsel %vm80_vm3, %v160_v19, %v77_v28  ;;  %v84_v32 = vmul.f32 %v162_v26, %v83_v29 }
 0x113   :  { %v92_v33 = vmul.f32 %v81_v31, %v58_v6  ;;  %v120_v40 = vsub.f32 1.0, %v119_v35 }
 0x114   :  { %v85_v36 = vmul.f32 0.5, %v84_v32 }
 0x115   :  { %v97_v37 = vmul.f32 %v157_v30, %v92_v33  ;;  %v121_v46 = vmul.f32 %v164_v27, %v120_v40 }
 0x116   :  { %v86_v38 = vsub.f32 1.5, %v85_v36 }
 0x117   :  { %v102_v39 = vadd.f32 %v158_v34, %v97_v37  ;;  %v122_v51 = vadd.f32 %v164_v27, %v121_v46 }
 0x118   :  { %v87_v41 = vmul.f32 %v162_v26, %v86_v38 }
 0x119   :  { %v104_v42 = vsel %vm49_vm0, %v102_v39, 0.0  ;;  %v124_v56 = vsel %vm123_vm7, %v164_v27, %v122_v51 }
 0x11a   :  { %v91_v43 = vsel %vm90_vm6, %v162_v26, %v87_v41  ;;  %v105_v44 = vrot.slane %v104_v42, 4 }
 0x11b   :  { %v93_v45 = vmul.f32 %v91_v43, %v59_v11 }
 0x11c   :  { %v106_v47 = vadd.f32 %v105_v44, %v104_v42 }
 0x11d   :  { %v98_v48 = vmul.f32 %v157_v30, %v93_v45 }
 0x11e   :  { %v107_v49 = vrot.slane %v106_v47, 2 }
 0x11f   :  { %v103_v50 = vadd.f32 %v158_v34, %v98_v48 }
 0x120   :  { %v108_v52 = vadd.f32 %v107_v49, %v106_v47 }
 0x121   :  { %v111_v53 = vsel %vm49_vm0, %v103_v50, 0.0 }
 0x122   :  { %v109_v54 = vrot.slane %v108_v52, 1  ;;  %v112_v55 = vrot.slane %v111_v53, 4 }
 0x124   :  { %v110_v57 = vadd.f32 %v109_v54, %v108_v52  ;;  %v113_v58 = vadd.f32 %v112_v55, %v111_v53 }
 0x126   :  { %v114_v59 = vrot.slane %v113_v58, 2  ;;  %v125_v60 = vmul.f32 %v124_v56, %v110_v57 }
 0x128   :  { %v115_v61 = vadd.f32 %v114_v59, %v113_v58  ;;  %v127_v62 = vsub.f32 %v102_v39, %v125_v60 }
 0x12a   :  { %v116_v63 = vrot.slane %v115_v61, 1  ;;  %129 = vst.msk [vmem:[#allocation7] sm:$0xff] %vm49_vm0, %v127_v62 }
 0x12c   :  { %v117_v0 = vadd.f32 %v116_v63, %v115_v61 }
 0x12e   :  { %v126_v1 = vmul.f32 %v124_v56, %v117_v0 }
 0x130   :  { %v128_v2 = vsub.f32 %v103_v50, %v126_v1 }
 0x132   :  { %130 = vst.msk [vmem:[#allocation7 + $0x8] sm:$0xff] %vm49_vm0, %v128_v2 }
 0x133   :  { %143 = dma.vmem_to_hbm [thread:$0]  %s136_s24, 256, %s138_s27, [#allocation4], %s244_s20, %s244_s20, %s245_s21  }
 0x134   :  { %241 = dma.done.wait [#allocation4], 256  }
 0x135   :  { %242 = vsyncadd [#allocation4], 4294967040 }
 0x136   :  { %148 = vsyncpa [#allocation3], 1 }
 0x137   :  { %149 = vsyncpa [#allocation6], 1 }
 0x138   :  { %150 = vsyncpa [#allocation4], 1 }

</bundles_post_ra>
